<compile_context>
chip_gen: v7x
topology: tpu7x:2x2x1
jax: 0.10.0
libtpu: 0.0.40
codegen_flags: <defaults>
</compile_context>

<pallas_src>
import math

import jax
import jax.numpy as jnp
from jax import lax
from jax.experimental import pallas as pl
from jax.experimental.pallas import tpu as pltpu

EPS = 1e-5


def _round_up(a, b):
    return (a + b - 1) // b * b


def _cdiv(a, b):
    return (a + b - 1) // b


def _vmem_budget_bytes():
    # Generation-aware scoped-VMEM budget: ~3/4 of physical per-core VMEM,
    # capped at 96 MiB (v5e/v6e: 128 MiB physical, v7x: 64 MiB per TC).
    cap = 64 * 1024 * 1024                      # conservative fallback (v7x)
    try:
        info = pltpu.get_tpu_info()
        cap = int(getattr(info, "vmem_capacity_bytes", cap))
    except Exception:
        pass
    return min(cap * 3 // 4, 96 * 1024 * 1024)


def _choose_rows_per_tile(NH, W, KD, C4, budget):
    """Image rows per grid tile (tile = R whole rows, TM = R*W matmul rows).

    Sized from the double-buffered VMEM footprint of the fused pass; the tile
    count is nudged to be even so the 'parallel' axis shards across both v7x
    TensorCores (no effect on single-TC v5e/v6e beyond one extra grid step).
    """
    g = max(1, 8 // math.gcd(W, 8))             # (R*W) % 8 == 0 granularity
    per_row = 4 * KD + 8 * C4                   # bf16 patches + f32 out, x2 bufs
    fixed = 4 * KD * C4 + (2 << 20)             # bf16 weight x2 bufs + slack
    # TODO(synk): for very large channel counts where the (KD, C4) weight alone
    # exceeds the budget, add a second grid axis over C4 with a (KD, TN) block.
    tm_max = (budget - fixed) // per_row if budget > fixed else W * g
    tm_max = int(min(max(tm_max, W * g), 4096))
    r = max(g, (tm_max // W) // g * g)
    r = min(r, _round_up(NH, g))
    n_tiles = _cdiv(NH, r)
    if n_tiles % 2 == 1 and NH > g:             # even tile count for v7x megacore
        n_tiles += 1
        r = max(g, _round_up(_cdiv(NH, n_tiles), g))
    return r


def _stats_kernel(p_ref, w_ref, st_ref):
    # MXU matmul (bf16 x bf16 -> f32 acc) + per-tile per-channel sum / sumsq.
    # Output is tiny: the full activation is never written to HBM in this pass.
    y = jnp.dot(p_ref[...], w_ref[...], preferred_element_type=jnp.float32)
    s = jnp.sum(y, axis=0, keepdims=True)        # (1, C4)
    sq = jnp.sum(y * y, axis=0, keepdims=True)   # (1, C4)
    row = lax.broadcasted_iota(jnp.int32, (8, y.shape[1]), 0)
    st = jnp.where(row == 0, s, 0.0) + jnp.where(row == 1, sq, 0.0)
    st_ref[...] = st[None]                       # (1, 8, C4): row0=sum, row1=sumsq


def _fused_deconv_bn_relu_kernel(p_ref, w_ref, sc_ref, sh_ref, o_ref):
    # Recompute the matmul, apply fused BN affine + ReLU (2 VPU ops/elem ride
    # free under the MXU/DMA), un-interleave the two vertical output phases and
    # store the final activation exactly once, lane-dense (last dim 2*C_pad).
    y = jnp.dot(p_ref[...], w_ref[...], preferred_element_type=jnp.float32)
    y = jnp.maximum(y * sc_ref[...] + sh_ref[...], 0.0)
    r, _, w_img, c2 = o_ref.shape                # block: (R, 2, W, 2*C_pad)
    o_ref[:, 0, :, :] = y[:, :c2].reshape(r, w_img, c2)   # output rows 2h
    o_ref[:, 1, :, :] = y[:, c2:].reshape(r, w_img, c2)   # output rows 2h+1


def deconv_block_forward(x, w, b, gamma, beta, *, stride=2, padding=1,
                         output_padding=1):
    """x: (N, C_in, H, W) f32 NCHW; w: (C_in, C_out, K, K) (ConvTranspose2d layout)."""
    N, C_in, H, W = x.shape
    assert w.shape[0] == C_in
    C_out, K = w.shape[1], w.shape[2]
    assert (K, stride, padding, output_padding) == (3, 2, 1, 1), (
        "kernel specialized to ConvTranspose2d(k=3, stride=2, padding=1, output_padding=1)")
    H_out, W_out = 2 * H, 2 * W

    # ---------- glue: phase-decomposed patches (built once in bf16, read twice) ----------
    # patches[m, t*C_in + ci] = x[n, h+dh, w+dw, ci], m=(n*H+h)*W+w, t=2*dh+dw
    xh = jnp.transpose(x, (0, 2, 3, 1)).astype(jnp.bfloat16)     # NHWC, bf16 for MXU
    xp = jnp.pad(xh, ((0, 0), (0, 1), (0, 1), (0, 0)))           # bottom/right halo
    taps = [xp[:, dh:dh + H, dw:dw + W, :] for dh in range(2) for dw in range(2)]
    patches = jnp.concatenate(taps, axis=-1).reshape(N * H * W, 4 * C_in)

    # ---------- fused weight, phase-major columns, padded channels ----------
    # column block p=2*ph+pw feeds output phase (ph, pw): kh=ph+1-2*dh, kw=pw+1-2*dw
    C_pad = _round_up(C_out, 64)     # 4*C_pad % 256 == 0 (MXU), 2*C_pad % 128 == 0 (lanes)
    C4 = 4 * C_pad
    KD = 4 * C_in
    w_f = jnp.zeros((KD, C4), jnp.float32)
    for dh in range(2):
        for dw in range(2):
            for ph in range(2):
                for pw in range(2):
                    kh, kw = ph + 1 - 2 * dh, pw + 1 - 2 * dw
                    if 0 <= kh < K and 0 <= kw < K:
                        t, p = 2 * dh + dw, 2 * ph + pw
                        w_f = w_f.at[t * C_in:(t + 1) * C_in,
                                     p * C_pad:p * C_pad + C_out].set(w[:, :, kh, kw])
    w_f = w_f.astype(jnp.bfloat16)
    del b   # cancels exactly under training-mode BatchNorm (mean subtraction)

    # ---------- tiling: whole image rows per tile, generation-aware VMEM ----------
    budget = int(_vmem_budget_bytes())
    NH = N * H
    R = _choose_rows_per_tile(NH, W, KD, C4, budget)
    NH_pad = _round_up(NH, R)
    G = NH_pad // R
    TM = R * W
    M, M_pad = NH * W, NH_pad * W
    if M_pad != M:
        # NOTE: padding MUST stay zero -- padded rows drop out of the BN stats
        # only because they contribute exactly zero to sum / sumsq.
        patches = jnp.pad(patches, ((0, M_pad - M), (0, 0)))

    cparams = pltpu.CompilerParams(dimension_semantics=("parallel",),
                                   vmem_limit_bytes=budget)

    # ---------- pass 1: stats-only matmul (no activation round trip) ----------
    stats = pl.pallas_call(
        _stats_kernel,
        out_shape=jax.ShapeDtypeStruct((G, 8, C4), jnp.float32),
        grid=(G,),
        in_specs=[pl.BlockSpec((TM, KD), lambda i: (i, 0)),
                  pl.BlockSpec((KD, C4), lambda i: (0, 0))],
        out_specs=pl.BlockSpec((1, 8, C4), lambda i: (i, 0, 0)),
        compiler_params=cparams,
    )(patches, w_f)

    # ---------- glue: finalize BatchNorm scale/shift (tiny arrays) ----------
    count = float(N * H_out * W_out)                      # real elements per channel
    sum_c = stats[:, 0, :].sum(axis=0).reshape(4, C_pad).sum(axis=0)
    sq_c = stats[:, 1, :].sum(axis=0).reshape(4, C_pad).sum(axis=0)
    mean = sum_c / count
    var = jnp.maximum(sq_c / count - mean * mean, 0.0)    # biased var (PyTorch norm)
    inv = lax.rsqrt(var + EPS)
    gamma_p = jnp.zeros((C_pad,), jnp.float32).at[:C_out].set(gamma)
    beta_p = jnp.zeros((C_pad,), jnp.float32).at[:C_out].set(beta)
    scale = gamma_p * inv
    shift = beta_p - mean * scale
    scale4 = jnp.tile(scale, 4).reshape(1, C4)            # phase-major broadcast
    shift4 = jnp.tile(shift, 4).reshape(1, C4)

    # ---------- pass 2: matmul + BN + ReLU + phase un-interleave, single store ----------
    out = pl.pallas_call(
        _fused_deconv_bn_relu_kernel,
        out_shape=jax.ShapeDtypeStruct((NH_pad, 2, W, 2 * C_pad), jnp.float32),
        grid=(G,),
        in_specs=[pl.BlockSpec((TM, KD), lambda i: (i, 0)),
                  pl.BlockSpec((KD, C4), lambda i: (0, 0)),
                  pl.BlockSpec((1, C4), lambda i: (0, 0)),
                  pl.BlockSpec((1, C4), lambda i: (0, 0))],
        out_specs=pl.BlockSpec((R, 2, W, 2 * C_pad), lambda i: (i, 0, 0, 0)),
        compiler_params=cparams,
    )(patches, w_f, scale4, shift4)

    # ---------- glue: free reshape to NHWC, slice channel pad, one NCHW transpose ----------
    out_nhwc = out[:NH].reshape(N, H_out, W_out, C_pad)[..., :C_out]
    return jnp.transpose(out_nhwc, (0, 3, 1, 2))


if __name__ == "__main__":
    key = jax.random.PRNGKey(0)
    k1, k2, k3, k4, k5 = jax.random.split(key, 5)

    N, C_in, C_out, H, W = 2, 4, 8, 16, 16
    K, stride, padding, output_padding = 3, 2, 1, 1

    x = jax.random.normal(k1, (N, C_in, H, W), jnp.float32)
    fan_in = C_out * K * K
    w = jax.random.uniform(k2, (C_in, C_out, K, K), jnp.float32,
                           minval=-1.0, maxval=1.0) / jnp.sqrt(float(fan_in))
    b = jax.random.uniform(k3, (C_out,), jnp.float32, minval=-0.1, maxval=0.1)
    gamma = 1.0 + 0.1 * jax.random.normal(k4, (C_out,), jnp.float32)
    beta = 0.1 * jax.random.normal(k5, (C_out,), jnp.float32)

    out = deconv_block_forward(x, w, b, gamma, beta, stride=stride,
                               padding=padding, output_padding=output_padding)
    out = jax.block_until_ready(out)
    assert out.shape == (N, C_out, 2 * H, 2 * W), out.shape

    # ---- plain-JAX reference: ConvTranspose2d (bf16 operands, f32 acc, bias
    #      included) -> training-mode BatchNorm -> ReLU ----
    x_bf, w_bf = x.astype(jnp.bfloat16), w.astype(jnp.bfloat16)
    w_conv = jnp.transpose(w_bf[:, :, ::-1, ::-1], (1, 0, 2, 3))   # OIHW, flipped
    pb = K - 1 - padding
    pa = K - 1 - padding + output_padding
    y_ref = lax.conv_general_dilated(
        x_bf, w_conv, window_strides=(1, 1), padding=[(pb, pa), (pb, pa)],
        lhs_dilation=(stride, stride),
        dimension_numbers=("NCHW", "OIHW", "NCHW"),
        preferred_element_type=jnp.float32) + b.reshape(1, C_out, 1, 1)
    mean = jnp.mean(y_ref, axis=(0, 2, 3), keepdims=True)
    var = jnp.mean(jnp.square(y_ref - mean), axis=(0, 2, 3), keepdims=True)
    ref = jnp.maximum(
        (y_ref - mean) * lax.rsqrt(var + EPS) * gamma.reshape(1, C_out, 1, 1)
        + beta.reshape(1, C_out, 1, 1), 0.0)

    err = float(jnp.max(jnp.abs(out - ref)))
    assert jnp.allclose(out, ref, atol=3e-3, rtol=3e-3), f"max abs err = {err}"
    print("KERNEL_OK")
</pallas_src>

<mosaic_0001>
module attributes {stable_mosaic.version = 11 : i64} {
  func.func @_stats_kernel(%arg0: i32, %arg1: memref<256x16xbf16, #tpu.memory_space<vmem>>, %arg2: memref<16x256xbf16, #tpu.memory_space<vmem>>, %arg3: memref<1x8x256xf32, #tpu.memory_space<vmem>>) attributes {dimension_semantics = [#tpu.dimension_semantics<parallel>], iteration_bounds = array<i64: 2>, scalar_prefetch = 0 : i64, scratch_operands = 0 : i64, tpu.core_type = #tpu.core_type<tc>, window_params = [{transform_indices = @transform_0, window_bounds = array<i64: 256, 16>}, {pipeline_mode = #tpu.pipeline_mode<synchronous>, transform_indices = @transform_1, window_bounds = array<i64: 16, 256>}, {transform_indices = @transform_2, window_bounds = array<i64: 1, 8, 256>}]} {
    %c0 = arith.constant 0 : index
    %c0_0 = arith.constant 0 : index
    %0 = vector.load %arg1[%c0, %c0_0] : memref<256x16xbf16, #tpu.memory_space<vmem>>, vector<256x16xbf16>
    %c0_1 = arith.constant 0 : index
    %c0_2 = arith.constant 0 : index
    %1 = vector.load %arg2[%c0_1, %c0_2] : memref<16x256xbf16, #tpu.memory_space<vmem>>, vector<16x256xbf16>
    %cst = arith.constant dense<0.000000e+00> : vector<256x256xf32>
    %2 = tpu.matmul %0, %1, %cst {dimension_numbers = #tpu.dot_dimension_numbers<[1], [0], [0], [1], [0, 0, 1, 1], [], []>} : vector<256x16xbf16>, vector<16x256xbf16>, vector<256x256xf32> -> vector<256x256xf32>
    %cst_3 = arith.constant dense<0.000000e+00> : vector<256xf32>
    %3 = vector.multi_reduction <add>, %2, %cst_3 [0] : vector<256x256xf32> to vector<256xf32>
    %4 = vector.shape_cast %3 : vector<256xf32> to vector<1x256xf32>
    %5 = arith.mulf %2, %2 : vector<256x256xf32>
    %cst_4 = arith.constant dense<0.000000e+00> : vector<256xf32>
    %6 = vector.multi_reduction <add>, %5, %cst_4 [0] : vector<256x256xf32> to vector<256xf32>
    %7 = vector.shape_cast %6 : vector<256xf32> to vector<1x256xf32>
    %8 = tpu.iota {dimensions = array<i32: 0>} : vector<8x256xi32>
    %c0_i32 = arith.constant 0 : i32
    %9 = vector.broadcast %c0_i32 : i32 to vector<8x256xi32>
    %10 = arith.cmpi eq, %8, %9 : vector<8x256xi32>
    %cst_5 = arith.constant 0.000000e+00 : f32
    %11 = vector.shape_cast %4 : vector<1x256xf32> to vector<1x256xf32>
    %12 = vector.broadcast %11 : vector<1x256xf32> to vector<8x256xf32>
    %13 = vector.broadcast %cst_5 : f32 to vector<8x256xf32>
    %14 = arith.select %10, %12, %13 : vector<8x256xi1>, vector<8x256xf32>
    %c1_i32 = arith.constant 1 : i32
    %15 = vector.broadcast %c1_i32 : i32 to vector<8x256xi32>
    %16 = arith.cmpi eq, %8, %15 : vector<8x256xi32>
    %cst_6 = arith.constant 0.000000e+00 : f32
    %17 = vector.shape_cast %7 : vector<1x256xf32> to vector<1x256xf32>
    %18 = vector.broadcast %17 : vector<1x256xf32> to vector<8x256xf32>
    %19 = vector.broadcast %cst_6 : f32 to vector<8x256xf32>
    %20 = arith.select %16, %18, %19 : vector<8x256xi1>, vector<8x256xf32>
    %21 = arith.addf %14, %20 : vector<8x256xf32>
    %22 = vector.shape_cast %21 : vector<8x256xf32> to vector<1x8x256xf32>
    %c0_7 = arith.constant 0 : index
    %c0_8 = arith.constant 0 : index
    %c0_9 = arith.constant 0 : index
    %23 = vector.load %arg3[%c0_7, %c0_8, %c0_9] : memref<1x8x256xf32, #tpu.memory_space<vmem>>, vector<1x8x256xf32>
    tpu.vector_store %arg3[%c0_7, %c0_8, %c0_9], %22 {strides = array<i32>} : memref<1x8x256xf32, #tpu.memory_space<vmem>>, vector<1x8x256xf32>,
    return
  }
  func.func @transform_0(%arg0: i32) -> (i32, i32) {
    %c0_i32 = arith.constant 0 : i32
    %c0_i32_0 = arith.constant 0 : i32
    return %arg0, %c0_i32 : i32, i32
  }
  func.func @transform_1(%arg0: i32) -> (i32, i32) {
    %c0_i32 = arith.constant 0 : i32
    %c0_i32_0 = arith.constant 0 : i32
    %c0_i32_1 = arith.constant 0 : i32
    return %c0_i32, %c0_i32_0 : i32, i32
  }
  func.func @transform_2(%arg0: i32) -> (i32, i32, i32) {
    %c0_i32 = arith.constant 0 : i32
    %c0_i32_0 = arith.constant 0 : i32
    %c0_i32_1 = arith.constant 0 : i32
    return %arg0, %c0_i32, %c0_i32_0 : i32, i32, i32
  }
}

</mosaic_0001>

<bundles_post_ra>
// kernel: tpu_custom_call.1
= control target key start
LH: loop header
LB: loop body
LE: loop exit
PB: predicated region body
PF: predicated region fallthrough
CT: control target
= control target key end

     0   :  { %7 = vsyncpa [#allocation3], 0  ;;  %s1301_s0 = inlined_call_operand.vmem [shape: bf16[512,16], index: 0, kind: input, shape index: {}]   ;;  %s1302_s1 = inlined_call_operand.vmem [shape: bf16[16,256], index: 1, kind: input, shape index: {}]   ;;  %s1303_s2 = inlined_call_operand.hbm [shape: f32[2,8,256], index: 2, kind: output, shape index: {}]  }
   0x1   :  { %9 = vsyncpa [#allocation3 + $0x1], 0  ;;  %s998_s9 = smov 0   ;;  %s1000_s10 = smov 0  }
   0x2   :  { %s1002_s11 = smov 0   ;;  %s1004_s12 = smov 0  }
   0x3 LB: > { %s1019_s13 = sadd.s32 4294967295, %s979_s12   ;;  %s809_s14 = sadd.s32 4294967294, %s979_s12   ;;  %s979_s12 = sphi %s1004_s12, %s1309_s12   ;;  %s975_s11 = sphi %s1002_s11, %s1308_s11   ;;  %s971_s10 = sphi %s1000_s10, %s1307_s10   ;;  %s967_s9 = sphi %s998_s9, %s1306_s9  }
   0x4   : > { %s1023_s15 = sadd.s32 1, %s979_s12   ;;  %s69_s16 = sadd.s32 1, %s975_s11 }
   0x5   : > { %s66_s17 = ssub.s32 %s979_s12, %s1023_s15  ;;  %p79_p0 = scmp.ne.s32.totalorder %s975_s11, %s971_s10 }
   0x6   : > { %p67_p1 = scmp.eq.s32.totalorder %s66_s17, 0  ;;  %p80_p2 = scmp.eq.s32.totalorder %s1019_s13, 1 }
   0x7   : > { %p85_p3 = scmp.ne.s32.totalorder %s971_s10, %s967_s9  ;;  %p86_p4 = scmp.eq.s32.totalorder %s809_s14, 1 }
   0x8   : > { %s1034_s18 = scalar_select %p67_p1, %s975_s11, %s69_s16  }
   0x9   : > { %p1036_p5 = por %p80_p2, %p79_p0  ;;  %p1040_p6 = por %p86_p4, %p85_p3 }
   0xa   : > { %p812_p7 = scmp.ge.s32.totalorder %s979_s12, 1  ;;  %p116_p8 = scmp.lt.s32.totalorder %s979_s12, 3 }
   0xc   : > { %p117_p9 = pnand %p812_p7, %p116_p8 }
   0xd   : > { %v898_v0 = vld [vmem:[%s1302_s1 + $0x4] ss:$8 sps:$4 sm:$0xff] (!%p117_p9)   ;;  %s814_s23 = sshll.u32 (!%p117_p9), %s1019_s13, 5  ;;  %v900_v1 = vld [vmem:[%s1302_s1] ss:$8 sps:$4 sm:$0xff] (!%p117_p9)   ;;  %v981_v2 = vmov (!%p117_p9), 0  }
   0xe   : > { %120 = sbr.rel (%p117_p9) target bundleno = 361 (0x169), region = 28  ;;  %350 = vmatprep.mubr.bf16.mxu0 (!%p117_p9), %v981_v2  ;;  %p139_p10 = scmp.lt.s32.totalorder (!%p117_p9), %s814_s23, 63  ;;  %430 = vmatprep.mubr.bf16.mxu1 (!%p117_p9), %v981_v2  ;;  %vm269_vm0 = vcmask (!%p117_p9), 130048  }
   0xf   : > { %318 = vmatprep.subr.bf16.mxu0 (!%p117_p9), %v898_v0  ;;  %856 = vmatprep.subr.bf16.mxu1 (!%p117_p9), %v898_v0  ;;  %s135_s30 = sand.u32 (!%p117_p9), 1, %s971_s10   ;;  %s855_s4 = sshll.u32 (!%p117_p9), %s1019_s13, 8 }
  0x10   : > { %319 = vmatpush1.bf16.msra.mxu0 (!%p117_p9), %v900_v1  ;;  %857 = vmatpush1.bf16.msra.mxu1 (!%p117_p9), %v900_v1  ;;  %s813_s3 = sshll.u32 (!%p117_p9), %s135_s30, 4  ;;  %s1257_s14 = scalar_lea.hbm (!%p117_p9), %s1303_s2, %s855_s4 }
  0x11   : > { %s137_s5 = scalar_lea.vmem (!%p117_p9), [#allocation2], %s813_s3  ;;  %s736_s13 = scalar_lea.sflag (!%p117_p9), [#allocation3], %s135_s30 }
  0x12   : > { %s750_s6 = sshll.u32 (!%p117_p9), %s137_s5, 4  ;;  %s982_s17 = smov (!%p117_p9), [#allocation2]   ;;  %s1259_s6 = int_to_ptr.vmem [resolvable:$true] %s750_s6 }
  0x13   : > { %s917_s16 = scalar_lea.vmem (!%p117_p9), %s1259_s6, 256  ;;  %s921_s21 = sshll.u32 (!%p117_p9), %s982_s17, 4  ;;  %s922_s21 = int_to_ptr.vmem [resolvable:$false] %s921_s21 }
  0x14   : > { %p918_p11 = scmp.ne.s32.totalorder (!%p117_p9), %s1259_s6, %s917_s16  ;;  %s923_s22 = scalar_lea.vmem (!%p117_p9), %s922_s21, 512 }
  0x15   : > { %s1311_s23 = smov (!%p139_p10, %s814_s23), 63  ;;  %p924_p0 = scmp.lt.s32.totalorder %s1259_s6, %s922_s21 }
  0x16   : > { %s815_s26 = sshll.u32 %s1311_s23, 2  ;;  %p919_p12 = pnand %p918_p11, %p1036_p5 }
  0x17   : > { %s1056_s29 = scalar_lea.vmem %s1301_s0, %s815_s26  ;;  %p925_p1 = scmp.lt.s32.totalorder %s923_s22, %s917_s16 }
  0x18   : > { %v901_v3 = vld [vmem:[%s1056_s29] sm:$0xff]   ;;  %v902_v5 = vld [vmem:[%s1056_s29 + $0x8] sm:$0xff]   ;;  %v903_v7 = vld [vmem:[%s1056_s29 + $0x10] sm:$0xff]   ;;  %p920_p13 = pneg %p919_p12 }
  0x19   : > { %834 = vmatmul.mubr.msk.bf16.vlgmr.msra.gmra.mrb[0].mxu0 %vm269_vm0, %v901_v3  ;;  %v905_v4 = vld [vmem:[%s1056_s29 + $0x40] sm:$0xff]   ;;  %v907_v6 = vld [vmem:[%s1056_s29 + $0x48] sm:$0xff]   ;;  %v909_v8 = vld [vmem:[%s1056_s29 + $0x50] sm:$0xff]   ;;  %p926_p2 = por %p925_p1, %p924_p0 }
  0x1a   : > { %360 = vmatprep.mubr.bf16.mxu0 %v981_v2  ;;  %842 = vmatmul.mubr.msk.bf16.vlgmr.msra.gmra.mrb[0].mxu1 %vm269_vm0, %v905_v4  ;;  %v904_v9 = vld [vmem:[%s1056_s29 + $0x18] sm:$0xff]   ;;  %v906_v11 = vld [vmem:[%s1056_s29 + $0x20] sm:$0xff]   ;;  %v908_v13 = vld [vmem:[%s1056_s29 + $0x28] sm:$0xff]  }
  0x1b   : > { %440 = vmatprep.mubr.bf16.mxu1 %v981_v2  ;;  %v911_v10 = vld [vmem:[%s1056_s29 + $0x58] sm:$0xff]   ;;  %v913_v12 = vld [vmem:[%s1056_s29 + $0x60] sm:$0xff]   ;;  %v914_v14 = vld [vmem:[%s1056_s29 + $0x68] sm:$0xff]   ;;  %p927_p3 = pnand %p926_p2, %p920_p13 }
  0x1c   : > { %v910_v15 = vld [vmem:[%s1056_s29 + $0x30] sm:$0xff]   ;;  %v912_v17 = vld [vmem:[%s1056_s29 + $0x38] sm:$0xff]  }
  0x1d   : > { %v915_v16 = vld [vmem:[%s1056_s29 + $0x70] sm:$0xff]   ;;  %v916_v18 = vld [vmem:[%s1056_s29 + $0x78] sm:$0xff]  }
  0x21   : > { %835 = vmatmul.mubr.msk.bf16.gmra.mrb[4].mxu0 %vm269_vm0, %v902_v5 }
  0x22   : > { %370 = vmatprep.mubr.bf16.mxu0 %v981_v2  ;;  %843 = vmatmul.mubr.msk.bf16.gmra.mrb[4].mxu1 %vm269_vm0, %v907_v6 }
  0x23   : > { %450 = vmatprep.mubr.bf16.mxu1 %v981_v2 }
  0x29   : > { %836 = vmatmul.mubr.msk.bf16.gmra.mrb[8].mxu0 %vm269_vm0, %v903_v7 }
  0x2a   : > { %380 = vmatprep.mubr.bf16.mxu0 %v981_v2  ;;  %844 = vmatmul.mubr.msk.bf16.gmra.mrb[8].mxu1 %vm269_vm0, %v909_v8 }
  0x2b   : > { %460 = vmatprep.mubr.bf16.mxu1 %v981_v2 }
  0x31   : > { %837 = vmatmul.mubr.msk.bf16.gmra.mrb[12].mxu0 %vm269_vm0, %v904_v9 }
  0x32   : > { %390 = vmatprep.mubr.bf16.mxu0 %v981_v2  ;;  %845 = vmatmul.mubr.msk.bf16.gmra.mrb[12].mxu1 %vm269_vm0, %v911_v10 }
  0x33   : > { %470 = vmatprep.mubr.bf16.mxu1 %v981_v2 }
  0x39   : > { %838 = vmatmul.mubr.msk.bf16.gmra.mrb[16].mxu0 %vm269_vm0, %v906_v11 }
  0x3a   : > { %400 = vmatprep.mubr.bf16.mxu0 %v981_v2  ;;  %846 = vmatmul.mubr.msk.bf16.gmra.mrb[16].mxu1 %vm269_vm0, %v913_v12 }
  0x3b   : > { %480 = vmatprep.mubr.bf16.mxu1 %v981_v2 }
  0x41   : > { %839 = vmatmul.mubr.msk.bf16.gmra.mrb[20].mxu0 %vm269_vm0, %v908_v13 }
  0x42   : > { %410 = vmatprep.mubr.bf16.mxu0 %v981_v2  ;;  %847 = vmatmul.mubr.msk.bf16.gmra.mrb[20].mxu1 %vm269_vm0, %v914_v14 }
  0x43   : > { %490 = vmatprep.mubr.bf16.mxu1 %v981_v2 }
  0x49   : > { %840 = vmatmul.mubr.msk.bf16.gmra.mrb[24].mxu0 %vm269_vm0, %v910_v15 }
  0x4a   : > { %420 = vmatprep.mubr.bf16.mxu0 %v981_v2  ;;  %848 = vmatmul.mubr.msk.bf16.gmra.mrb[24].mxu1 %vm269_vm0, %v915_v16 }
  0x4b   : > { %500 = vmatprep.mubr.bf16.mxu1 %v981_v2 }
  0x51   : > { %841 = vmatmul.mubr.msk.bf16.gmra.mrb[28].mxu0 %vm269_vm0, %v912_v17 }
  0x52   : > { %849 = vmatmul.mubr.msk.bf16.gmra.mrb[28].mxu1 %vm269_vm0, %v916_v18 }
  0xec   : > { %v352_v19 = vpop.f32.mrb[0].mxu0 }
  0xed   : > { %v354_v20 = vpop.f32.mrb[1].mxu0  ;;  %v585_v22 = vmul.f32 %v352_v19, %v352_v19  ;;  %v1090_v29 = vpop.f32.mrb[0].mxu1 }
  0xee   : > { %v356_v21 = vpop.f32.mrb[2].mxu0  ;;  %v586_v26 = vmul.f32 %v354_v20, %v354_v20  ;;  %v1092_v31 = vpop.f32.mrb[1].mxu1 }
  0xef   : > { %v511_v23 = vadd.f32 %v356_v21, %v352_v19  ;;  %v587_v24 = vmul.f32 %v356_v21, %v356_v21  ;;  %v358_v25 = vpop.f32.mrb[3].mxu0  ;;  %v1094_v33 = vpop.f32.mrb[2].mxu1 }
  0xf0   : > { %v548_v27 = vadd.f32 %v358_v25, %v354_v20  ;;  %v588_v28 = vmul.f32 %v358_v25, %v358_v25  ;;  %v1096_v34 = vpop.f32.mrb[3].mxu1 }
  0xf1   : > { %v649_v30 = vadd.f32 %v587_v24, %v585_v22 }
  0xf2   : > { %v686_v32 = vadd.f32 %v588_v28, %v586_v26 }
  0xf4   : > { %v362_v35 = vpop.f32.mrb[4].mxu0 }
  0xf5   : > { %v512_v36 = vadd.f32 %v511_v23, %v362_v35  ;;  %v589_v37 = vmul.f32 %v362_v35, %v362_v35  ;;  %v364_v38 = vpop.f32.mrb[5].mxu0  ;;  %v1098_v49 = vpop.f32.mrb[4].mxu1 }
  0xf6   : > { %v549_v39 = vadd.f32 %v548_v27, %v364_v38  ;;  %v590_v40 = vmul.f32 %v364_v38, %v364_v38  ;;  %v366_v41 = vpop.f32.mrb[6].mxu0  ;;  %v1100_v51 = vpop.f32.mrb[5].mxu1 }
  0xf7   : > { %v650_v42 = vadd.f32 %v649_v30, %v589_v37  ;;  %v513_v43 = vadd.f32 %v512_v36, %v366_v41  ;;  %v591_v44 = vmul.f32 %v366_v41, %v366_v41  ;;  %v368_v45 = vpop.f32.mrb[7].mxu0  ;;  %v1102_v53 = vpop.f32.mrb[6].mxu1 }
  0xf8   : > { %v687_v46 = vadd.f32 %v686_v32, %v590_v40  ;;  %v550_v47 = vadd.f32 %v549_v39, %v368_v45  ;;  %v592_v48 = vmul.f32 %v368_v45, %v368_v45  ;;  %v1104_v54 = vpop.f32.mrb[7].mxu1 }
  0xf9   : > { %v651_v50 = vadd.f32 %v650_v42, %v591_v44 }
  0xfa   : > { %v688_v52 = vadd.f32 %v687_v46, %v592_v48 }
  0xfc   : > { %v372_v55 = vpop.f32.mrb[8].mxu0 }
  0xfd   : > { %v514_v56 = vadd.f32 %v513_v43, %v372_v55  ;;  %v593_v57 = vmul.f32 %v372_v55, %v372_v55  ;;  %v374_v58 = vpop.f32.mrb[9].mxu0  ;;  %v1106_v5 = vpop.f32.mrb[8].mxu1 }
  0xfe   : > { %v551_v59 = vadd.f32 %v550_v47, %v374_v58  ;;  %v594_v60 = vmul.f32 %v374_v58, %v374_v58  ;;  %v376_v61 = vpop.f32.mrb[10].mxu0  ;;  %v1108_v7 = vpop.f32.mrb[9].mxu1 }
  0xff   : > { %v652_v62 = vadd.f32 %v651_v50, %v593_v57  ;;  %v515_v63 = vadd.f32 %v514_v56, %v376_v61  ;;  %v595_v0 = vmul.f32 %v376_v61, %v376_v61  ;;  %v378_v1 = vpop.f32.mrb[11].mxu0  ;;  %v1110_v9 = vpop.f32.mrb[10].mxu1 }
 0x100   : > { %v689_v2 = vadd.f32 %v688_v52, %v594_v60  ;;  %v552_v3 = vadd.f32 %v551_v59, %v378_v1  ;;  %v596_v4 = vmul.f32 %v378_v1, %v378_v1  ;;  %v1112_v10 = vpop.f32.mrb[11].mxu1 }
 0x101   : > { %v653_v6 = vadd.f32 %v652_v62, %v595_v0 }
 0x102   : > { %v690_v8 = vadd.f32 %v689_v2, %v596_v4 }
 0x104   : > { %v382_v11 = vpop.f32.mrb[12].mxu0 }
 0x105   : > { %v516_v12 = vadd.f32 %v515_v63, %v382_v11  ;;  %v597_v13 = vmul.f32 %v382_v11, %v382_v11  ;;  %v384_v14 = vpop.f32.mrb[13].mxu0  ;;  %v1114_v25 = vpop.f32.mrb[12].mxu1 }
 0x106   : > { %v553_v15 = vadd.f32 %v552_v3, %v384_v14  ;;  %v598_v16 = vmul.f32 %v384_v14, %v384_v14  ;;  %v386_v17 = vpop.f32.mrb[14].mxu0  ;;  %v1116_v27 = vpop.f32.mrb[13].mxu1 }
 0x107   : > { %v654_v18 = vadd.f32 %v653_v6, %v597_v13  ;;  %v517_v19 = vadd.f32 %v516_v12, %v386_v17  ;;  %v599_v20 = vmul.f32 %v386_v17, %v386_v17  ;;  %v388_v21 = vpop.f32.mrb[15].mxu0  ;;  %v1118_v30 = vpop.f32.mrb[14].mxu1 }
 0x108   : > { %v691_v22 = vadd.f32 %v690_v8, %v598_v16  ;;  %v554_v23 = vadd.f32 %v553_v15, %v388_v21  ;;  %v600_v24 = vmul.f32 %v388_v21, %v388_v21  ;;  %v1120_v32 = vpop.f32.mrb[15].mxu1 }
 0x109   : > { %v655_v26 = vadd.f32 %v654_v18, %v599_v20 }
 0x10a   : > { %v692_v28 = vadd.f32 %v691_v22, %v600_v24 }
 0x10c   : > { %v392_v35 = vpop.f32.mrb[16].mxu0 }
 0x10d   : > { %v518_v36 = vadd.f32 %v517_v19, %v392_v35  ;;  %v601_v37 = vmul.f32 %v392_v35, %v392_v35  ;;  %v394_v38 = vpop.f32.mrb[17].mxu0  ;;  %v1122_v50 = vpop.f32.mrb[16].mxu1 }
 0x10e   : > { %v555_v39 = vadd.f32 %v554_v23, %v394_v38  ;;  %v602_v40 = vmul.f32 %v394_v38, %v394_v38  ;;  %v396_v41 = vpop.f32.mrb[18].mxu0  ;;  %v1124_v55 = vpop.f32.mrb[17].mxu1 }
 0x10f   : > { %v656_v42 = vadd.f32 %v655_v26, %v601_v37  ;;  %v519_v43 = vadd.f32 %v518_v36, %v396_v41  ;;  %v603_v44 = vmul.f32 %v396_v41, %v396_v41  ;;  %v398_v45 = vpop.f32.mrb[19].mxu0  ;;  %v1126_v57 = vpop.f32.mrb[18].mxu1 }
 0x110   : > { %v693_v46 = vadd.f32 %v692_v28, %v602_v40  ;;  %v556_v47 = vadd.f32 %v555_v39, %v398_v45  ;;  %v604_v48 = vmul.f32 %v398_v45, %v398_v45  ;;  %v1128_v58 = vpop.f32.mrb[19].mxu1 }
 0x111   : > { %v657_v52 = vadd.f32 %v656_v42, %v603_v44 }
 0x112   : > { %v694_v56 = vadd.f32 %v693_v46, %v604_v48 }
 0x114   : > { %v402_v59 = vpop.f32.mrb[20].mxu0 }
 0x115   : > { %v520_v60 = vadd.f32 %v519_v43, %v402_v59  ;;  %v605_v61 = vmul.f32 %v402_v59, %v402_v59  ;;  %v404_v62 = vpop.f32.mrb[21].mxu0  ;;  %v1130_v13 = vpop.f32.mrb[20].mxu1 }
 0x116   : > { %v557_v63 = vadd.f32 %v556_v47, %v404_v62  ;;  %v606_v0 = vmul.f32 %v404_v62, %v404_v62  ;;  %v406_v1 = vpop.f32.mrb[22].mxu0  ;;  %v1132_v15 = vpop.f32.mrb[21].mxu1 }
 0x117   : > { %v658_v2 = vadd.f32 %v657_v52, %v605_v61  ;;  %v521_v3 = vadd.f32 %v520_v60, %v406_v1  ;;  %v607_v4 = vmul.f32 %v406_v1, %v406_v1  ;;  %v408_v6 = vpop.f32.mrb[23].mxu0  ;;  %v1134_v17 = vpop.f32.mrb[22].mxu1 }
 0x118   : > { %v695_v8 = vadd.f32 %v694_v56, %v606_v0  ;;  %v558_v11 = vadd.f32 %v557_v63, %v408_v6  ;;  %v608_v12 = vmul.f32 %v408_v6, %v408_v6  ;;  %v1136_v18 = vpop.f32.mrb[23].mxu1 }
 0x119   : > { %v659_v14 = vadd.f32 %v658_v2, %v607_v4 }
 0x11a   : > { %v696_v16 = vadd.f32 %v695_v8, %v608_v12  ;;  %v617_v8 = vmul.f32 %v1090_v29, %v1090_v29 }
 0x11c   : > { %v412_v19 = vpop.f32.mrb[24].mxu0 }
 0x11d   : > { %v522_v20 = vadd.f32 %v521_v3, %v412_v19  ;;  %v609_v21 = vmul.f32 %v412_v19, %v412_v19  ;;  %v414_v22 = vpop.f32.mrb[25].mxu0  ;;  %v1138_v41 = vpop.f32.mrb[24].mxu1 }
 0x11e   : > { %v559_v23 = vadd.f32 %v558_v11, %v414_v22  ;;  %v610_v24 = vmul.f32 %v414_v22, %v414_v22  ;;  %v416_v26 = vpop.f32.mrb[26].mxu0  ;;  %v1140_v43 = vpop.f32.mrb[25].mxu1  ;;  %v619_v22 = vmul.f32 %v1094_v33, %v1094_v33 }
 0x11f   : > { %v660_v28 = vadd.f32 %v659_v14, %v609_v21  ;;  %v523_v35 = vadd.f32 %v522_v20, %v416_v26  ;;  %v611_v36 = vmul.f32 %v416_v26, %v416_v26  ;;  %v418_v37 = vpop.f32.mrb[27].mxu0  ;;  %v1142_v45 = vpop.f32.mrb[26].mxu1 }
 0x120   : > { %v697_v38 = vadd.f32 %v696_v16, %v610_v24  ;;  %v560_v39 = vadd.f32 %v559_v23, %v418_v37  ;;  %v612_v40 = vmul.f32 %v418_v37, %v418_v37  ;;  %v1144_v46 = vpop.f32.mrb[27].mxu1  ;;  %v618_v16 = vmul.f32 %v1092_v31, %v1092_v31 }
 0x121   : > { %v661_v42 = vadd.f32 %v660_v28, %v611_v36 }
 0x122   : > { %v698_v44 = vadd.f32 %v697_v38, %v612_v40  ;;  %v622_v38 = vmul.f32 %v1100_v51, %v1100_v51  ;;  %v623_v40 = vmul.f32 %v1102_v53, %v1102_v53 }
 0x124   : > { %v422_v47 = vpop.f32.mrb[28].mxu0 }
 0x125   : > { %v524_v48 = vadd.f32 %v523_v35, %v422_v47  ;;  %v613_v52 = vmul.f32 %v422_v47, %v422_v47  ;;  %v424_v56 = vpop.f32.mrb[29].mxu0  ;;  %v1146_v6 = vpop.f32.mrb[28].mxu1 }
 0x126   : > { %v561_v59 = vadd.f32 %v560_v39, %v424_v56  ;;  %v614_v60 = vmul.f32 %v424_v56, %v424_v56  ;;  %v426_v61 = vpop.f32.mrb[30].mxu0  ;;  %v1151_v14 = vpop.f32.mrb[29].mxu1 }
 0x127   : > { %v662_v62 = vadd.f32 %v661_v42, %v613_v52  ;;  %v525_v63 = vadd.f32 %v524_v48, %v426_v61  ;;  %v615_v0 = vmul.f32 %v426_v61, %v426_v61  ;;  %v428_v1 = vpop.f32.mrb[31].mxu0  ;;  %v1156_v21 = vpop.f32.mrb[30].mxu1 }
 0x128   : > { %v699_v2 = vadd.f32 %v698_v44, %v614_v60  ;;  %v562_v3 = vadd.f32 %v561_v59, %v428_v1  ;;  %v616_v4 = vmul.f32 %v428_v1, %v428_v1  ;;  %v1161_v26 = vpop.f32.mrb[31].mxu1 }
 0x129   : > { %v526_v11 = vadd.f32 %v525_v63, %v1090_v29  ;;  %v663_v12 = vadd.f32 %v662_v62, %v615_v0  ;;  %v620_v29 = vmul.f32 %v1096_v34, %v1096_v34 }
 0x12a   : > { %v563_v19 = vadd.f32 %v562_v3, %v1092_v31  ;;  %v700_v20 = vadd.f32 %v699_v2, %v616_v4  ;;  %v621_v31 = vmul.f32 %v1098_v49, %v1098_v49 }
 0x12b   : > { %v527_v23 = vadd.f32 %v526_v11, %v1094_v33  ;;  %v664_v24 = vadd.f32 %v663_v12, %v617_v8 }
 0x12c   : > { %v564_v28 = vadd.f32 %v563_v19, %v1096_v34  ;;  %v701_v35 = vadd.f32 %v700_v20, %v618_v16  ;;  %v624_v34 = vmul.f32 %v1104_v54, %v1104_v54  ;;  %v633_v19 = vmul.f32 %v1122_v50, %v1122_v50 }
 0x12d   : > { %v528_v36 = vadd.f32 %v527_v23, %v1098_v49  ;;  %v665_v37 = vadd.f32 %v664_v24, %v619_v22  ;;  %v625_v49 = vmul.f32 %v1106_v5, %v1106_v5  ;;  %v634_v22 = vmul.f32 %v1124_v55, %v1124_v55 }
 0x12e   : > { %v565_v33 = vadd.f32 %v564_v28, %v1100_v51  ;;  %v702_v39 = vadd.f32 %v701_v35, %v620_v29  ;;  %v626_v51 = vmul.f32 %v1108_v7, %v1108_v7  ;;  %v635_v29 = vmul.f32 %v1126_v57, %v1126_v57 }
 0x12f   : > { %v529_v42 = vadd.f32 %v528_v36, %v1102_v53  ;;  %v666_v44 = vadd.f32 %v665_v37, %v621_v31  ;;  %v627_v53 = vmul.f32 %v1110_v9, %v1110_v9  ;;  %v636_v35 = vmul.f32 %v1128_v58, %v1128_v58 }
 0x130   : > { %v566_v47 = vadd.f32 %v565_v33, %v1104_v54  ;;  %v703_v48 = vadd.f32 %v702_v39, %v622_v38  ;;  %v628_v54 = vmul.f32 %v1112_v10, %v1112_v10  ;;  %v637_v36 = vmul.f32 %v1130_v13, %v1130_v13 }
 0x131   : > { %v667_v52 = vadd.f32 %v666_v44, %v623_v40  ;;  %v530_v56 = vadd.f32 %v529_v42, %v1106_v5  ;;  %v629_v5 = vmul.f32 %v1114_v25, %v1114_v25  ;;  %v638_v38 = vmul.f32 %v1132_v15, %v1132_v15 }
 0x132   : > { %v704_v59 = vadd.f32 %v703_v48, %v624_v34  ;;  %v567_v60 = vadd.f32 %v566_v47, %v1108_v7  ;;  %v630_v7 = vmul.f32 %v1116_v27, %v1116_v27  ;;  %v639_v39 = vmul.f32 %v1134_v17, %v1134_v17 }
 0x133   : > { %v531_v61 = vadd.f32 %v530_v56, %v1110_v9  ;;  %v668_v62 = vadd.f32 %v667_v52, %v625_v49  ;;  %v631_v9 = vmul.f32 %v1118_v30, %v1118_v30  ;;  %v640_v42 = vmul.f32 %v1136_v18, %v1136_v18 }
 0x134   : > { %v568_v63 = vadd.f32 %v567_v60, %v1112_v10  ;;  %v705_v0 = vadd.f32 %v704_v59, %v626_v51  ;;  %v632_v10 = vmul.f32 %v1120_v32, %v1120_v32  ;;  %v641_v34 = vmul.f32 %v1138_v41, %v1138_v41 }
 0x135   : > { %v532_v1 = vadd.f32 %v531_v61, %v1114_v25  ;;  %v669_v2 = vadd.f32 %v668_v62, %v627_v53  ;;  %v642_v48 = vmul.f32 %v1140_v43, %v1140_v43  ;;  %v643_v52 = vmul.f32 %v1142_v45, %v1142_v45 }
 0x136   : > { %v569_v3 = vadd.f32 %v568_v63, %v1116_v27  ;;  %v706_v4 = vadd.f32 %v705_v0, %v628_v54  ;;  %v646_v59 = vmul.f32 %v1151_v14, %v1151_v14  ;;  %v647_v54 = vmul.f32 %v1156_v21, %v1156_v21 }
 0x137   : > { %v533_v8 = vadd.f32 %v532_v1, %v1118_v30  ;;  %v670_v11 = vadd.f32 %v669_v2, %v629_v5 }
 0x138   : > { %v570_v12 = vadd.f32 %v569_v3, %v1120_v32  ;;  %v707_v16 = vadd.f32 %v706_v4, %v630_v7 }
 0x139   : > { %v534_v25 = vadd.f32 %v533_v8, %v1122_v50  ;;  %v671_v20 = vadd.f32 %v670_v11, %v631_v9  ;;  %v723_v9 = vlaneseq }
 0x13a   : > { %v571_v27 = vadd.f32 %v570_v12, %v1124_v55  ;;  %v708_v23 = vadd.f32 %v707_v16, %v632_v10 }
 0x13b   : > { %v672_v30 = vadd.f32 %v671_v20, %v633_v19  ;;  %v535_v24 = vadd.f32 %v534_v25, %v1126_v57  ;;  %v724_v19 = vshrl.u32 %v723_v9, 7 }
 0x13c   : > { %v709_v32 = vadd.f32 %v708_v23, %v634_v22  ;;  %v572_v28 = vadd.f32 %v571_v27, %v1128_v58 }
 0x13d   : > { %v673_v50 = vadd.f32 %v672_v30, %v635_v29  ;;  %v536_v31 = vadd.f32 %v535_v24, %v1130_v13  ;;  %vm725_vm1 = vcmp.eq.s32.totalorder %v724_v19, 0  ;;  %vm728_vm2 = vcmp.eq.s32.totalorder %v724_v19, 1 }
 0x13e   : > { %v710_v55 = vadd.f32 %v709_v32, %v636_v35  ;;  %v573_v37 = vadd.f32 %v572_v28, %v1132_v15 }
 0x13f   : > { %v674_v33 = vadd.f32 %v673_v50, %v637_v36  ;;  %v537_v57 = vadd.f32 %v536_v31, %v1134_v17 }
 0x140   : > { %v711_v40 = vadd.f32 %v710_v55, %v638_v38  ;;  %v574_v58 = vadd.f32 %v573_v37, %v1136_v18  ;;  %v645_v18 = vmul.f32 %v1146_v6, %v1146_v6 }
 0x141   : > { %v675_v44 = vadd.f32 %v674_v33, %v639_v39  ;;  %v538_v13 = vadd.f32 %v537_v57, %v1138_v41  ;;  %v644_v41 = vmul.f32 %v1144_v46, %v1144_v46 }
 0x142   : > { %v712_v47 = vadd.f32 %v711_v40, %v640_v42  ;;  %v575_v15 = vadd.f32 %v574_v58, %v1140_v43 }
 0x143   : > { %v676_v49 = vadd.f32 %v675_v44, %v641_v34  ;;  %v539_v17 = vadd.f32 %v538_v13, %v1142_v45 }
 0x144   : > { %v713_v56 = vadd.f32 %v712_v47, %v642_v48  ;;  %v576_v51 = vadd.f32 %v575_v15, %v1144_v46  ;;  %v648_v46 = vmul.f32 %v1161_v26, %v1161_v26 }
 0x145   : > { %v677_v60 = vadd.f32 %v676_v49, %v643_v52  ;;  %v540_v43 = vadd.f32 %v539_v17, %v1146_v6 }
 0x146   : > { %v714_v53 = vadd.f32 %v713_v56, %v644_v41  ;;  %v577_v61 = vadd.f32 %v576_v51, %v1151_v14 }
 0x147   : > { %v678_v62 = vadd.f32 %v677_v60, %v645_v18  ;;  %v541_v45 = vadd.f32 %v540_v43, %v1156_v21 }
 0x148   : > { %v715_v63 = vadd.f32 %v714_v53, %v646_v59  ;;  %v578_v0 = vadd.f32 %v577_v61, %v1161_v26 }
 0x149   : > { %v542_v5 = vrot.slane %v541_v45, 4  ;;  %v679_v1 = vadd.f32 %v678_v62, %v647_v54 }
 0x14a   : > { %v579_v2 = vrot.slane %v578_v0, 4  ;;  %v716_v6 = vadd.f32 %v715_v63, %v648_v46 }
 0x14b   : > { %v543_v7 = vadd.f32 %v542_v5, %v541_v45  ;;  %v680_v14 = vrot.slane %v679_v1, 4 }
 0x14c   : > { %v580_v3 = vadd.f32 %v579_v2, %v578_v0  ;;  %v717_v4 = vrot.slane %v716_v6, 4 }
 0x14d   : > { %v544_v8 = vrot.slane %v543_v7, 2  ;;  %v681_v11 = vadd.f32 %v680_v14, %v679_v1 }
 0x14e   : > { %v581_v21 = vrot.slane %v580_v3, 2  ;;  %v718_v10 = vadd.f32 %v717_v4, %v716_v6 }
 0x14f   : > { %v545_v12 = vadd.f32 %v544_v8, %v543_v7  ;;  %v682_v16 = vrot.slane %v681_v11, 2 }
 0x150   : > { %v582_v25 = vadd.f32 %v581_v21, %v580_v3  ;;  %v719_v26 = vrot.slane %v718_v10, 2 }
 0x151   : > { %v546_v20 = vrot.slane %v545_v12, 1  ;;  %v683_v27 = vadd.f32 %v682_v16, %v681_v11 }
 0x152   : > { %v583_v22 = vrot.slane %v582_v25, 1  ;;  %v720_v23 = vadd.f32 %v719_v26, %v718_v10 }
 0x153   : > { %v547_v30 = vadd.f32 %v546_v20, %v545_v12  ;;  %v684_v24 = vrot.slane %v683_v27, 1 }
 0x154   : > { %v584_v29 = vadd.f32 %v583_v22, %v582_v25  ;;  %v721_v32 = vrot.slane %v720_v23, 1 }
 0x155   : > { %v685_v28 = vadd.f32 %v684_v24, %v683_v27  ;;  %v726_v50 = vsel %vm725_vm1, %v547_v30, 0.0 }
 0x156   : > { %v722_v35 = vadd.f32 %v721_v32, %v720_v23  ;;  %v727_v36 = vsel %vm725_vm1, %v584_v29, 0.0 }
 0x157   : > { %v729_v31 = vsel %vm728_vm2, %v685_v28, 0.0 }
 0x158   : > { %v730_v55 = vsel %vm728_vm2, %v722_v35, 0.0  ;;  %v731_v37 = vadd.f32 %v729_v31, %v726_v50 }
 0x159   : > { %v732_v38 = vadd.f32 %v730_v55, %v727_v36 }
 0x15a   : > { %733 = vst [vmem:[%s137_s5] sm:$0xff] %v731_v37 }
 0x15b   : > { %734 = vst [vmem:[%s137_s5 + $0x8] sm:$0xff] %v732_v38 }
 0x15c   : > { %930 = shalt.err (!%p927_p3)
}
 0x15d   : > { %s931_s23 = scalar_lea.hbm %s1257_s14, 256  ;;  %s935_s26 = scalar_lea.hbm %s1303_s2, 512 }
 0x15e   : > { %p932_p4 = scmp.ne.s32.totalorder %s1257_s14, %s931_s23  ;;  %p936_p9 = scmp.lt.u32.totalorder %s1257_s14, %s1303_s2 }
 0x15f   : > { %p937_p10 = scmp.lt.u32.totalorder %s935_s26, %s931_s23  ;;  %p939_p12 = scmp.lt.u32.totalorder %s931_s23, %s1257_s14 }
 0x160   : > { %p933_p7 = pnand %p932_p4, %p1036_p5 }
 0x161   : > { %p938_p11 = por %p937_p10, %p936_p9 }
 0x162   : > { %p934_p8 = pneg %p933_p7 }
 0x163   : > { %p940_p13 = por %p939_p12, %p938_p11 }
 0x165   : > { %p941_p0 = pnand %p940_p13, %p934_p8 }
 0x167   : > { %944 = shalt.err (!%p941_p0)
}
 0x168   : > { %858 = dma.vmem_to_hbm [thread:$0]  (%p1036_p5), %s1259_s6, 256, %s1257_s14, %s736_s13  }
 0x169 PF: > { %p864_p1 = scmp.ge.s32.totalorder %s979_s12, 2  ;;  %s762_s29 = sand.u32 1, %s967_s9  }
 0x16a   : > { %s763_s30 = scalar_lea.sflag [#allocation3], %s762_s29 }
 0x16b   : > { %p861_p2 = pnand %p864_p1, %p1040_p6 }
 0x16d   : > { %962 = dma.done.wait (!%p861_p2), %s763_s30, 256  }
 0x16e   : > { %964 = vsyncadd (!%p861_p2), %s763_s30, 4294967040  ;;  %p12_p3 = scmp.ge.s32.totalorder %s1023_s15, 4   ;;  %s1306_s9 = smov %s971_s10 }
 0x16f   : > { %s1307_s10 = smov %s975_s11  ;;  %s1308_s11 = smov %s1034_s18 }
 0x170   : > { %s1309_s12 = smov %s1023_s15  ;;  %14 = sbr.rel (!%p12_p3) target bundleno = 3 (0x3), region = 63 }
 0x177   :  { %768 = vsyncpa [#allocation3], 1 }
 0x178   :  { %770 = vsyncpa [#allocation3 + $0x1], 1 }

</bundles_post_ra>
